<compile_context>
chip_gen: v5e
topology: v5e:2x2
jax: 0.10.0
libtpu: 0.0.40
codegen_flags: <defaults>
</compile_context>

<pallas_src>
import jax
import jax.numpy as jnp
from jax.experimental import pallas as pl
from jax.experimental.pallas import tpu as pltpu


def _feature_dropout_kernel(x_ref, keep_ref, o_ref):
    # x_ref, o_ref: (BC_T, HW_T) VMEM tiles.  keep_ref: (BC_T, 1) f32 mask.
    # keep > 0.5 -> keep the whole feature-map row; else zero it (no rescale).
    o_ref[...] = jnp.where(
        keep_ref[...] > jnp.float32(0.5),
        x_ref[...],
        jnp.zeros((), dtype=x_ref.dtype),
    )


def _round_up(x, m):
    return (x + m - 1) // m * m


def random_feature_dropout_no_scaling(x, p=0.5, *, key, training=True):
    """x: (B, C, H, W) float array. Returns same shape/dtype."""
    if not training:
        return x

    b, c, h, w = x.shape
    bc, hw = b * c, h * w
    itemsize = jnp.dtype(x.dtype).itemsize

    # theta drawn once per forward; per-(batch, channel) keep mask drawn once.
    k_theta, k_mask = jax.random.split(key)
    theta = jax.random.uniform(k_theta, (), minval=0.0, maxval=p,
                               dtype=jnp.float32)
    u = jax.random.uniform(k_mask, (bc, 1), dtype=jnp.float32)
    keep = (u >= theta).astype(jnp.float32)  # P(keep) = 1 - theta

    x2d = x.reshape(bc, hw)

    # Tile sizes: lane-dense (multiple of 128) HW tiles, sublane-aligned BC
    # tiles.  Capped so (in + out) x double-buffering stays ~4 MiB -> safe on
    # every generation's scoped VMEM (v5e 16 MiB, v6e 32 MiB, v7x 32 MiB).
    sublane = 8 * max(1, 4 // itemsize)            # 8 (f32) / 16 (bf16)
    BC_T = min(_round_up(bc, sublane), 256)
    HW_T = min(_round_up(hw, 128), 1024)

    bc_p = _round_up(bc, BC_T)
    hw_p = _round_up(hw, HW_T)
    if (bc_p, hw_p) != (bc, hw):
        x2d = jnp.pad(x2d, ((0, bc_p - bc), (0, hw_p - hw)))
        keep = jnp.pad(keep, ((0, bc_p - bc), (0, 0)))

    grid = (bc_p // BC_T, hw_p // HW_T)

    out2d = pl.pallas_call(
        _feature_dropout_kernel,
        out_shape=jax.ShapeDtypeStruct((bc_p, hw_p), x.dtype),
        grid=grid,
        in_specs=[
            pl.BlockSpec((BC_T, HW_T), lambda i, j: (i, j)),
            pl.BlockSpec((BC_T, 1), lambda i, j: (i, 0)),
        ],
        out_specs=pl.BlockSpec((BC_T, HW_T), lambda i, j: (i, j)),
        compiler_params=pltpu.CompilerParams(
            dimension_semantics=("parallel", "parallel"),
        ),
        cost_estimate=pl.CostEstimate(
            flops=bc_p * hw_p,
            transcendentals=0,
            bytes_accessed=2 * bc_p * hw_p * itemsize + bc_p * 4,
        ),
    )(x2d, keep)

    return out2d[:bc, :hw].reshape(b, c, h, w)


if __name__ == "__main__":
    key = jax.random.PRNGKey(0)
    k_x, k_drop = jax.random.split(key)

    # Small NCHW input consistent with the module's point-feature usage.
    B, C, H, W = 2, 4, 16, 16
    x = jax.random.normal(k_x, (B, C, H, W), dtype=jnp.float32)

    y = random_feature_dropout_no_scaling(x, p=0.5, key=k_drop, training=True)
    y = jax.block_until_ready(y)

    # Sanity: each feature map is either identical to input or all-zero
    # (feature dropout semantics, no rescaling).
    y2 = y.reshape(B * C, H * W)
    x2 = x.reshape(B * C, H * W)
    for r in range(B * C):
        same = bool(jnp.allclose(y2[r], x2[r]))
        zero = bool(jnp.allclose(y2[r], 0.0))
        assert same or zero, f"row {r} is neither kept nor fully dropped"

    # Eval-mode path is identity.
    y_eval = random_feature_dropout_no_scaling(
        x, p=0.5, key=k_drop, training=False
    )
    assert bool(jnp.allclose(y_eval, x))

    print("KERNEL_OK")
</pallas_src>

<mosaic_0001>
module attributes {stable_mosaic.version = 11 : i64} {
  func.func @_feature_dropout_kernel(%arg0: i32, %arg1: i32, %arg2: memref<8x256xf32, #tpu.memory_space<vmem>>, %arg3: memref<8x1xf32, #tpu.memory_space<vmem>>, %arg4: memref<8x256xf32, #tpu.memory_space<vmem>>) attributes {dimension_semantics = [#tpu.dimension_semantics<parallel>, #tpu.dimension_semantics<parallel>], iteration_bounds = array<i64: 1, 1>, scalar_prefetch = 0 : i64, scratch_operands = 0 : i64, tpu.core_type = #tpu.core_type<tc>, window_params = [{transform_indices = @transform_0, window_bounds = array<i64: 8, 256>}, {transform_indices = @transform_1, window_bounds = array<i64: 8, 1>}, {transform_indices = @transform_2, window_bounds = array<i64: 8, 256>}]} {
    %c0 = arith.constant 0 : index
    %c0_0 = arith.constant 0 : index
    %0 = vector.load %arg3[%c0, %c0_0] : memref<8x1xf32, #tpu.memory_space<vmem>>, vector<8x1xf32>
    %cst = arith.constant 5.000000e-01 : f32
    %1 = vector.broadcast %cst : f32 to vector<8x1xf32>
    %2 = arith.cmpf ogt, %0, %1 : vector<8x1xf32>
    %c0_1 = arith.constant 0 : index
    %c0_2 = arith.constant 0 : index
    %3 = vector.load %arg2[%c0_1, %c0_2] : memref<8x256xf32, #tpu.memory_space<vmem>>, vector<8x256xf32>
    %cst_3 = arith.constant 0.000000e+00 : f32
    %4 = vector.shape_cast %2 : vector<8x1xi1> to vector<8x1xi1>
    %5 = vector.broadcast %4 : vector<8x1xi1> to vector<8x256xi1>
    %6 = vector.broadcast %cst_3 : f32 to vector<8x256xf32>
    %7 = arith.select %5, %3, %6 : vector<8x256xi1>, vector<8x256xf32>
    %c0_4 = arith.constant 0 : index
    %c0_5 = arith.constant 0 : index
    %8 = vector.load %arg4[%c0_4, %c0_5] : memref<8x256xf32, #tpu.memory_space<vmem>>, vector<8x256xf32>
    tpu.vector_store %arg4[%c0_4, %c0_5], %7 {strides = array<i32>} : memref<8x256xf32, #tpu.memory_space<vmem>>, vector<8x256xf32>,
    return
  }
  func.func @transform_0(%arg0: i32, %arg1: i32) -> (i32, i32) {
    %c0_i32 = arith.constant 0 : i32
    return %arg0, %arg1 : i32, i32
  }
  func.func @transform_1(%arg0: i32, %arg1: i32) -> (i32, i32) {
    %c0_i32 = arith.constant 0 : i32
    %c0_i32_0 = arith.constant 0 : i32
    return %arg0, %c0_i32 : i32, i32
  }
  func.func @transform_2(%arg0: i32, %arg1: i32) -> (i32, i32) {
    %c0_i32 = arith.constant 0 : i32
    return %arg0, %arg1 : i32, i32
  }
}

</mosaic_0001>

<bundles_post_ra>
// kernel: tpu_custom_call.1
= control target key start
LH: loop header
LB: loop body
LE: loop exit
PB: predicated region body
PF: predicated region fallthrough
CT: control target
= control target key end

     0   :  { %7 = vsyncpa [#allocation3], 0  ;;  %s139_s0 = inlined_call_operand.hbm [shape: f32[8,256], index: 0, kind: input, shape index: {}]   ;;  %s140_s1 = inlined_call_operand.vmem [shape: f32[8,1], index: 1, kind: input, shape index: {}]   ;;  %s141_s2 = inlined_call_operand.hbm [shape: f32[8,256], index: 2, kind: output, shape index: {}]  }
   0x1   :  { %8 = vsyncpa [#allocation4], 0  ;;  %s14_s11 = sshll.u32 %s139_s0, 4  ;;  %s112_s12 = smov [#allocation2]   ;;  %s15_s11 = int_to_ptr.hbm [resolvable:$true] %s14_s11 }
   0x2   :  { %s16_s13 = sshll.u32 %s112_s12, 4  ;;  %s17_s13 = int_to_ptr.vmem [resolvable:$true] %s16_s13 }
   0x3   :  { %19 = dma.hbm_to_vmem [thread:$0]  %s15_s11, 256, %s17_s13, [#allocation3]  }
   0x4   :  { %108 = dma.done.wait [#allocation3], 256  }
   0x5   :  { %109 = vsyncadd [#allocation3], 4294967040  ;;  %v113_v0 = vmov 0   ;;  %v26_v1 = vld [vmem:[%s140_s1] sm:$0xff]  ;;  %v29_v4 = vld [vmem:[#allocation2 + $0x8] sm:$0xff]  ;;  %s114_s16 = smov [#allocation5]  }
   0x6   :  { %59 = vset.pattern.permute.xlu0 %v113_v0  ;;  %vm27_vm0 = vcmp.gt.f32.partialorder %v26_v1, 0.5  ;;  %v28_v3 = vld [vmem:[#allocation2] sm:$0xff]  ;;  %s44_s0 = sshll.u32 %s114_s16, 4  ;;  %s46_s19 = sshll.u32 %s141_s2, 4  ;;  %s45_s0 = int_to_ptr.vmem [resolvable:$true] %s44_s0  ;;  %s47_s19 = int_to_ptr.hbm [resolvable:$true] %s46_s19 }
   0x7   :  { %v30_v2 = vsel %vm27_vm0, 1, %v113_v0 }
   0x8   :  { %32 = vperm.xlu0 %59, %v30_v2  }
  0x7a   :  { %v33_v5 = vpop.permute.xlu0 %32 }
  0x7b   :  { %vm34_vm1 = vcmp.eq.s32.totalorder %v33_v5, 1 }
  0x7c   :  { %v35_v6 = vsel %vm34_vm1, %v28_v3, 0.0  ;;  %v36_v7 = vsel %vm34_vm1, %v29_v4, 0.0 }
  0x7d   :  { %37 = vst [vmem:[#allocation5] sm:$0xff] %v35_v6 }
  0x7e   :  { %38 = vst [vmem:[#allocation5 + $0x8] sm:$0xff] %v36_v7 }
  0x7f   :  { %49 = dma.vmem_to_hbm [thread:$0]  %s45_s0, 256, %s47_s19, [#allocation4]  }
  0x80   :  { %110 = dma.done.wait [#allocation4], 256  }
  0x81   :  { %111 = vsyncadd [#allocation4], 4294967040 }
  0x82   :  { %54 = vsyncpa [#allocation3], 1 }
  0x83   :  { %55 = vsyncpa [#allocation4], 1 }

</bundles_post_ra>
